<compile_context>
chip_gen: v7x
topology: tpu7x:2x2x1
jax: 0.10.0
libtpu: 0.0.40
codegen_flags: <defaults>
</compile_context>

<pallas_src>
import jax
import jax.numpy as jnp
from jax import lax
from jax.experimental import pallas as pl
from jax.experimental.pallas import tpu as pltpu


def _complex_kernel(a_ref, b_ref, e2r_ref, e2i_ref, s_ref):
    # a = R_real*E1_real - R_img*E1_img   (pairs with E2_real)
    # b = R_real*E1_img + R_img*E1_real   (pairs with E2_img)
    # Contract over D (dim 1 of both operands): E2 used in stored (tn, D)
    # layout, no transpose materialized.  f32 accumulation on the MXU.
    contract = (((1,), (1,)), ((), ()))
    s = lax.dot_general(a_ref[...], e2r_ref[...], contract,
                        preferred_element_type=jnp.float32)
    s = s + lax.dot_general(b_ref[...], e2i_ref[...], contract,
                            preferred_element_type=jnp.float32)
    # sigmoid(s) = 1 / (1 + exp(-s)); exp + approx reciprocal -> EUP slot.
    s_ref[...] = pl.reciprocal(1.0 + jnp.exp(-s), approx=True).astype(s_ref.dtype)


def _round_up(x, m):
    return (x + m - 1) // m * m


def _vmem_capacity_bytes():
    # Generation-aware budget (128 MiB v5e/v6e, 64 MiB per-TC v7x).
    try:
        return int(pltpu.get_tpu_info().vmem_capacity_bytes)
    except Exception:
        return 64 << 20  # conservative (v7x-sized) fallback


def complex_forward(E1_real, R_real, E2_real, E1_img, R_img, E2_img,
                    *, tn=512, max_tb=4096, out_dtype=jnp.float32):
    B, D = E1_real.shape
    N, D2 = E2_real.shape
    assert D == D2
    out_bytes = jnp.dtype(out_dtype).itemsize

    # ---- Tile selection -----------------------------------------------------
    # N-tile: lane-dense (multiple of 128); default 512 fills the 2x256 MXU.
    tn = min(tn, _round_up(N, 128))

    # B-tile: as large as the VMEM budget allows so the E2 table is streamed
    # as few times as possible (arithmetic intensity vs the E2 stream ~ tb).
    capacity = _vmem_capacity_bytes()
    budget = int(capacity * 0.7)                       # headroom for scratch
    fixed = 8 * tn * D                                 # 2 bf16 E2 tiles, 2-buffered
    per_tb = 8 * D + 2 * tn * out_bytes                # 2 bf16 E1 tiles (2-buf) + out
    tb_max = max(8, (budget - fixed) // per_tb)
    if tb_max >= 16:
        tb_max = (tb_max // 16) * 16                   # bf16-friendly sublane count
    tb = max(8, min(tb_max, max_tb, _round_up(B, 8)))

    Bp = _round_up(B, tb)
    Np = _round_up(N, tn)

    # ---- Wrapper-side prep (done once, not per grid step) -------------------
    # Combine in f32 (v5e has no bf16 VALU), cast the result once to bf16.
    e1r = E1_real.astype(jnp.float32)
    e1i = E1_img.astype(jnp.float32)
    rr = R_real.astype(jnp.float32)
    ri = R_img.astype(jnp.float32)
    a = (rr * e1r - ri * e1i).astype(jnp.bfloat16)     # pairs with E2_real
    b = (rr * e1i + ri * e1r).astype(jnp.bfloat16)     # pairs with E2_img

    def pad_rows(x, rows):
        if x.shape[0] == rows:
            return x
        return jnp.pad(x, ((0, rows - x.shape[0]), (0, 0)))

    a = pad_rows(a, Bp)
    b = pad_rows(b, Bp)
    # E2 is the streamed side: cast to bf16 once (no f32 upcast, no f32 pad copy).
    e2r = pad_rows(E2_real.astype(jnp.bfloat16), Np)
    e2i = pad_rows(E2_img.astype(jnp.bfloat16), Np)

    grid = (Bp // tb, Np // tn)

    # E1-side blocks depend only on i -> resident across the inner j axis.
    e1_spec = pl.BlockSpec((tb, D), lambda i, j: (i, 0))
    e2_spec = pl.BlockSpec((tn, D), lambda i, j: (j, 0))
    out_spec = pl.BlockSpec((tb, tn), lambda i, j: (i, j))

    # Honest advisory cost: E1 side read once, E2 re-streamed per i-tile.
    cost = pl.CostEstimate(
        flops=2 * 2 * Bp * Np * D,
        transcendentals=Bp * Np,
        bytes_accessed=int(2 * Bp * D * 2
                           + (Bp // tb) * 2 * Np * D * 2
                           + Bp * Np * out_bytes),
    )

    # Working set (E1 bf16 + E2 bf16, both counted double-buffered, + output),
    # clamped against the physical capacity of the current generation.
    ws = 8 * tb * D + 8 * tn * D + 2 * tb * tn * out_bytes
    vmem_limit = int(min(capacity * 0.9, ws + (8 << 20)))

    out = pl.pallas_call(
        _complex_kernel,
        out_shape=jax.ShapeDtypeStruct((Bp, Np), out_dtype),
        grid=grid,
        in_specs=[e1_spec, e1_spec, e2_spec, e2_spec],
        out_specs=out_spec,
        compiler_params=pltpu.CompilerParams(
            dimension_semantics=("parallel", "parallel"),
            vmem_limit_bytes=vmem_limit),
        cost_estimate=cost,
    )(a, b, e2r, e2i)

    return out[:B, :N]


def complex_forward_ref(E1_real, R_real, E2_real, E1_img, R_img, E2_img):
    # Pure-JAX reference mirroring the PyTorch code.
    def dist_mult(E1, R, E2):
        return (E1 * R) @ E2.T
    rrr = dist_mult(R_real, E1_real, E2_real)
    rii = dist_mult(R_real, E1_img, E2_img)
    iri = dist_mult(R_img, E1_real, E2_img)
    iir = dist_mult(R_img, E1_img, E2_real)
    return jax.nn.sigmoid(rrr + rii + iri - iir)


if __name__ == "__main__":
    # Small deterministic shapes: batch B=8, candidates N=16, embedding D=32.
    B, N, D = 8, 16, 32
    key = jax.random.PRNGKey(0)
    k = jax.random.split(key, 6)
    E1_real = jax.random.normal(k[0], (B, D), jnp.float32)
    R_real = jax.random.normal(k[1], (B, D), jnp.float32)
    E2_real = jax.random.normal(k[2], (N, D), jnp.float32)
    E1_img = jax.random.normal(k[3], (B, D), jnp.float32)
    R_img = jax.random.normal(k[4], (B, D), jnp.float32)
    E2_img = jax.random.normal(k[5], (N, D), jnp.float32)

    out = complex_forward(E1_real, R_real, E2_real, E1_img, R_img, E2_img)
    out = jax.block_until_ready(out)

    ref = complex_forward_ref(E1_real, R_real, E2_real, E1_img, R_img, E2_img)
    assert out.shape == (B, N)
    # bf16 MXU operands (f32 accumulation) + approx reciprocal -> looser tol.
    assert jnp.allclose(out, ref, atol=3e-2, rtol=3e-2), (
        float(jnp.max(jnp.abs(out - ref))))

    # TODO(synk): forward_fact (row-wise sum variant) is not part of forward();
    # it would be a trivial per-row reduction kernel if needed.
    print("KERNEL_OK")
</pallas_src>

<mosaic_0001>
module attributes {stable_mosaic.version = 11 : i64} {
  func.func @_complex_kernel(%arg0: i32, %arg1: i32, %arg2: memref<8x32xbf16, #tpu.memory_space<vmem>>, %arg3: memref<8x32xbf16, #tpu.memory_space<vmem>>, %arg4: memref<128x32xbf16, #tpu.memory_space<vmem>>, %arg5: memref<128x32xbf16, #tpu.memory_space<vmem>>, %arg6: memref<8x128xf32, #tpu.memory_space<vmem>>) attributes {dimension_semantics = [#tpu.dimension_semantics<parallel>, #tpu.dimension_semantics<parallel>], iteration_bounds = array<i64: 1, 1>, scalar_prefetch = 0 : i64, scratch_operands = 0 : i64, tpu.core_type = #tpu.core_type<tc>, window_params = [{transform_indices = @transform_0, window_bounds = array<i64: 8, 32>}, {transform_indices = @transform_1, window_bounds = array<i64: 8, 32>}, {transform_indices = @transform_2, window_bounds = array<i64: 128, 32>}, {transform_indices = @transform_3, window_bounds = array<i64: 128, 32>}, {transform_indices = @transform_4, window_bounds = array<i64: 8, 128>}]} {
    %c0 = arith.constant 0 : index
    %c0_0 = arith.constant 0 : index
    %0 = vector.load %arg2[%c0, %c0_0] : memref<8x32xbf16, #tpu.memory_space<vmem>>, vector<8x32xbf16>
    %c0_1 = arith.constant 0 : index
    %c0_2 = arith.constant 0 : index
    %1 = vector.load %arg4[%c0_1, %c0_2] : memref<128x32xbf16, #tpu.memory_space<vmem>>, vector<128x32xbf16>
    %cst = arith.constant dense<0.000000e+00> : vector<8x128xf32>
    %2 = tpu.matmul %0, %1, %cst {dimension_numbers = #tpu.dot_dimension_numbers<[1], [1], [0], [0], [0, 0, 1, 0], [], []>} : vector<8x32xbf16>, vector<128x32xbf16>, vector<8x128xf32> -> vector<8x128xf32>
    %c0_3 = arith.constant 0 : index
    %c0_4 = arith.constant 0 : index
    %3 = vector.load %arg3[%c0_3, %c0_4] : memref<8x32xbf16, #tpu.memory_space<vmem>>, vector<8x32xbf16>
    %c0_5 = arith.constant 0 : index
    %c0_6 = arith.constant 0 : index
    %4 = vector.load %arg5[%c0_5, %c0_6] : memref<128x32xbf16, #tpu.memory_space<vmem>>, vector<128x32xbf16>
    %cst_7 = arith.constant dense<0.000000e+00> : vector<8x128xf32>
    %5 = tpu.matmul %3, %4, %cst_7 {dimension_numbers = #tpu.dot_dimension_numbers<[1], [1], [0], [0], [0, 0, 1, 0], [], []>} : vector<8x32xbf16>, vector<128x32xbf16>, vector<8x128xf32> -> vector<8x128xf32>
    %6 = arith.addf %2, %5 : vector<8x128xf32>
    %cst_8 = arith.constant 0.000000e+00 : f32
    %7 = vector.broadcast %cst_8 : f32 to vector<8x128xf32>
    %8 = arith.subf %7, %6 : vector<8x128xf32>
    %9 = math.exp %8 : vector<8x128xf32>
    %cst_9 = arith.constant 1.000000e+00 : f32
    %10 = vector.broadcast %cst_9 : f32 to vector<8x128xf32>
    %11 = arith.addf %10, %9 : vector<8x128xf32>
    %12 = tpu.reciprocal %11 {approx = true} : vector<8x128xf32> -> vector<8x128xf32>
    %c0_10 = arith.constant 0 : index
    %c0_11 = arith.constant 0 : index
    %13 = vector.load %arg6[%c0_10, %c0_11] : memref<8x128xf32, #tpu.memory_space<vmem>>, vector<8x128xf32>
    tpu.vector_store %arg6[%c0_10, %c0_11], %12 {strides = array<i32>} : memref<8x128xf32, #tpu.memory_space<vmem>>, vector<8x128xf32>,
    return
  }
  func.func @transform_0(%arg0: i32, %arg1: i32) -> (i32, i32) {
    %c0_i32 = arith.constant 0 : i32
    %c0_i32_0 = arith.constant 0 : i32
    return %arg0, %c0_i32 : i32, i32
  }
  func.func @transform_1(%arg0: i32, %arg1: i32) -> (i32, i32) {
    %c0_i32 = arith.constant 0 : i32
    %c0_i32_0 = arith.constant 0 : i32
    return %arg0, %c0_i32 : i32, i32
  }
  func.func @transform_2(%arg0: i32, %arg1: i32) -> (i32, i32) {
    %c0_i32 = arith.constant 0 : i32
    %c0_i32_0 = arith.constant 0 : i32
    return %arg1, %c0_i32 : i32, i32
  }
  func.func @transform_3(%arg0: i32, %arg1: i32) -> (i32, i32) {
    %c0_i32 = arith.constant 0 : i32
    %c0_i32_0 = arith.constant 0 : i32
    return %arg1, %c0_i32 : i32, i32
  }
  func.func @transform_4(%arg0: i32, %arg1: i32) -> (i32, i32) {
    %c0_i32 = arith.constant 0 : i32
    return %arg0, %arg1 : i32, i32
  }
}

</mosaic_0001>

<bundles_post_ra>
// kernel: tpu_custom_call.1
= control target key start
LH: loop header
LB: loop body
LE: loop exit
PB: predicated region body
PF: predicated region fallthrough
CT: control target
= control target key end

     0   :  { %v412_v1 = vmov 0.0   ;;  %vm93_vm0 = vcmask 261120   ;;  %vm413_vm1 = vmmov 0   ;;  %s524_s0 = inlined_call_operand.vmem [shape: bf16[8,32], index: 0, kind: input, shape index: {}]   ;;  %s525_s1 = inlined_call_operand.vmem [shape: bf16[8,32], index: 1, kind: input, shape index: {}]   ;;  %s526_s2 = inlined_call_operand.vmem [shape: bf16[128,32], index: 2, kind: input, shape index: {}]   ;;  %s527_s3 = inlined_call_operand.vmem [shape: bf16[128,32], index: 3, kind: input, shape index: {}]   ;;  %s528_s4 = inlined_call_operand.hbm [shape: f32[8,128], index: 4, kind: output, shape index: {}]  }
   0x1   :  { %v368_v0 = vld [vmem:[%s527_s3] sm:$0xff]   ;;  %324 = vmatprep.subr.bf16.mxu1 %v412_v1  ;;  %344 = vmatprep.subr.bf16.mxu0 %v412_v1  ;;  %v370_v5 = vld [vmem:[%s527_s3 + $0x8] sm:$0xff]   ;;  %v372_v9 = vld [vmem:[%s527_s3 + $0x10] sm:$0xff]  }
   0x2   :  { %v369_v2 = vld [vmem:[%s526_s2] sm:$0xff]   ;;  %v98_v3 = vsel %vm93_vm0, %v368_v0, 0  ;;  %v371_v6 = vld [vmem:[%s526_s2 + $0x8] sm:$0xff]   ;;  %v101_v7 = vsel %vm93_vm0, %v370_v5, 0  ;;  %v373_v10 = vld [vmem:[%s526_s2 + $0x10] sm:$0xff]   ;;  %v104_v11 = vsel %vm93_vm0, %v372_v9, 0  ;;  %340 = vmatprep.mubr.msk.bf16.mxu1 %vm413_vm1, %v412_v1  ;;  %360 = vmatprep.mubr.msk.bf16.mxu0 %vm413_vm1, %v412_v1 }
   0x3   :  { %325 = vmatpush3.bf16.xpose.msra.mxu1 %v98_v3  ;;  %v205_v4 = vsel %vm93_vm0, %v369_v2, 0  ;;  %v208_v8 = vsel %vm93_vm0, %v371_v6, 0  ;;  %v211_v12 = vsel %vm93_vm0, %v373_v10, 0 }
   0x4   :  { %345 = vmatpush3.bf16.xpose.msra.mxu0 %v205_v4  ;;  %326 = vmatprep.subr.bf16.mxu1 %v412_v1 }
   0x5   :  { %346 = vmatprep.subr.bf16.mxu0 %v412_v1 }
   0xb   :  { %327 = vmatpush3.bf16.xpose.msra.mxu1 %v101_v7 }
   0xc   :  { %347 = vmatpush3.bf16.xpose.msra.mxu0 %v208_v8  ;;  %328 = vmatprep.subr.bf16.mxu1 %v412_v1 }
   0xd   :  { %348 = vmatprep.subr.bf16.mxu0 %v412_v1 }
   0xe   :  { %9 = vsyncpa [#allocation3], 0  ;;  %v374_v13 = vld [vmem:[%s527_s3 + $0x18] sm:$0xff]   ;;  %v376_v17 = vld [vmem:[%s527_s3 + $0x20] sm:$0xff]  }
   0xf   :  { %v375_v14 = vld [vmem:[%s526_s2 + $0x18] sm:$0xff]   ;;  %v107_v15 = vsel %vm93_vm0, %v374_v13, 0  ;;  %v377_v18 = vld [vmem:[%s526_s2 + $0x20] sm:$0xff]   ;;  %v110_v19 = vsel %vm93_vm0, %v376_v17, 0  ;;  %v378_v21 = vld [vmem:[%s527_s3 + $0x28] sm:$0xff]  }
  0x10   :  { %v214_v16 = vsel %vm93_vm0, %v375_v14, 0  ;;  %v217_v20 = vsel %vm93_vm0, %v377_v18, 0  ;;  %v379_v22 = vld [vmem:[%s526_s2 + $0x28] sm:$0xff]   ;;  %v113_v23 = vsel %vm93_vm0, %v378_v21, 0  ;;  %v380_v25 = vld [vmem:[%s527_s3 + $0x30] sm:$0xff]   ;;  %v382_v29 = vld [vmem:[%s527_s3 + $0x38] sm:$0xff]  }
  0x11   :  { %v220_v24 = vsel %vm93_vm0, %v379_v22, 0  ;;  %v381_v26 = vld [vmem:[%s526_s2 + $0x30] sm:$0xff]   ;;  %v116_v27 = vsel %vm93_vm0, %v380_v25, 0  ;;  %v383_v30 = vld [vmem:[%s526_s2 + $0x38] sm:$0xff]   ;;  %v119_v31 = vsel %vm93_vm0, %v382_v29, 0 }
  0x12   :  { %v223_v28 = vsel %vm93_vm0, %v381_v26, 0  ;;  %v226_v32 = vsel %vm93_vm0, %v383_v30, 0  ;;  %v36_v33 = vld [vmem:[%s525_s1] sm:$0xf] }
  0x13   :  { %329 = vmatpush3.bf16.xpose.msra.mxu1 %v104_v11  ;;  %v19_v34 = vld [vmem:[%s524_s0] sm:$0xf]  ;;  %s414_s0 = smov [#allocation2]  }
  0x14   :  { %349 = vmatpush3.bf16.xpose.msra.mxu0 %v211_v12  ;;  %330 = vmatprep.subr.bf16.mxu1 %v412_v1  ;;  %s280_s1 = sshll.u32 %s414_s0, 4  ;;  %s281_s1 = int_to_ptr.vmem [resolvable:$true] %s280_s1 }
  0x15   :  { %350 = vmatprep.subr.bf16.mxu0 %v412_v1  ;;  %s388_s2 = scalar_lea.vmem %s281_s1, 128  ;;  %p393_p1 = scmp.lt.s32.totalorder %s281_s1, %s281_s1 }
  0x16   :  { %p389_p0 = scmp.ne.s32.totalorder %s281_s1, %s388_s2  ;;  %p394_p2 = scmp.lt.s32.totalorder %s388_s2, %s388_s2 }
  0x18   :  { %p395_p3 = por %p394_p2, %p393_p1 }
  0x1a   :  { %p396_p4 = pnand %p395_p3, %p389_p0 }
  0x1b   :  { %331 = vmatpush3.bf16.xpose.msra.mxu1 %v107_v15 }
  0x1c   :  { %351 = vmatpush3.bf16.xpose.msra.mxu0 %v214_v16  ;;  %332 = vmatprep.subr.bf16.mxu1 %v412_v1 }
  0x1d   :  { %352 = vmatprep.subr.bf16.mxu0 %v412_v1 }
  0x23   :  { %333 = vmatpush3.bf16.xpose.msra.mxu1 %v110_v19 }
  0x24   :  { %353 = vmatpush3.bf16.xpose.msra.mxu0 %v217_v20  ;;  %334 = vmatprep.subr.bf16.mxu1 %v412_v1 }
  0x25   :  { %354 = vmatprep.subr.bf16.mxu0 %v412_v1 }
  0x2b   :  { %335 = vmatpush3.bf16.xpose.msra.mxu1 %v113_v23 }
  0x2c   :  { %355 = vmatpush3.bf16.xpose.msra.mxu0 %v220_v24  ;;  %336 = vmatprep.subr.bf16.mxu1 %v412_v1 }
  0x2d   :  { %356 = vmatprep.subr.bf16.mxu0 %v412_v1 }
  0x33   :  { %337 = vmatpush3.bf16.xpose.msra.mxu1 %v116_v27 }
  0x34   :  { %357 = vmatpush3.bf16.xpose.msra.mxu0 %v223_v28  ;;  %338 = vmatprep.subr.bf16.mxu1 %v412_v1 }
  0x35   :  { %358 = vmatprep.subr.bf16.mxu0 %v412_v1 }
  0x3b   :  { %339 = vmatpush3.bf16.xpose.msra.mxu1 %v119_v31 }
  0x3c   :  { %359 = vmatpush3.bf16.xpose.msra.mxu0 %v226_v32 }
  0x42   :  { %341 = vmatmul.mubr.msk.bf16.vlgmr.msra.gmra.mrb[0].mxu1 %vm93_vm0, %v36_v33 }
  0x43   :  { %361 = vmatmul.mubr.msk.bf16.vlgmr.msra.gmra.mrb[0].mxu0 %vm93_vm0, %v19_v34 }
 0x115   :  { %v155_v35 = vpop.f32.mrb[0].mxu1 }
 0x116   :  { %v262_v36 = vpop.f32.mrb[0].mxu0  ;;  %v342_v37 = vpop.f32.mrb[1].mxu1 }
 0x117   :  { %v263_v38 = vadd.f32 %v262_v36, %v155_v35  ;;  %v362_v39 = vpop.f32.mrb[1].mxu0  ;;  %v158_v40 = vpop.f32.mrb[2].mxu1 }
 0x118   :  { %v265_v41 = vpop.f32.mrb[2].mxu0  ;;  %v343_v42 = vpop.f32.mrb[3].mxu1 }
 0x119   :  { %v268_v43 = vsub.f32 0.0, %v263_v38  ;;  %v363_v44 = vpop.f32.mrb[3].mxu0 }
 0x11b   :  { %v269_v45 = vmul.f32 1.442695, %v268_v43 }
 0x11d   :  { %384 = vpow2.f32 %v269_v45 }
 0x127   :  { %v385_v46 = vpop.eup %384 }
 0x128   :  { %v271_v47 = vadd.f32 1.0, %v385_v46 }
 0x12a   :  { %386 = vrcp.f32 %v271_v47 }
 0x134   :  { %v387_v48 = vpop.eup %386 }
 0x135   :  { %273 = vst [vmem:[#allocation2] sm:$0xff] %v387_v48 }
 0x136   :  { %399 = shalt.err (!%p396_p4)
}
 0x137   :  { %s400_s26 = scalar_lea.hbm %s528_s4, 128 }
 0x138   :  { %p401_p5 = scmp.ne.s32.totalorder %s528_s4, %s400_s26  ;;  %p404_p6 = scmp.lt.u32.totalorder %s400_s26, %s528_s4 }
 0x13a   :  { %p406_p7 = pnand %p404_p6, %p401_p5 }
 0x13c   :  { %409 = shalt.err (!%p406_p7)
}
 0x13d   :  { %283 = dma.vmem_to_hbm [thread:$0]  %s281_s1, 128, %s528_s4, [#allocation3]  }
 0x13e   :  { %410 = dma.done.wait [#allocation3], 128  }
 0x13f   :  { %411 = vsyncadd [#allocation3], 4294967168 }
 0x140   :  { %287 = vsyncpa [#allocation3], 1 }

</bundles_post_ra>
